<compile_context>
chip_gen: v7x
topology: tpu7x:2x2x1
jax: 0.10.0
libtpu: 0.0.40
codegen_flags: <defaults>
</compile_context>

<pallas_src>
import math
import functools

import jax
import jax.numpy as jnp
from jax.experimental import pallas as pl
from jax.experimental.pallas import tpu as pltpu


def _soft_select_kernel(w_ref, a_ref, o_ref):
    # Pure streamed matmul: (B, K_total) @ (K_total, O_tile) on the MXU,
    # f32 accumulation. All weight-combining work is hoisted to the wrapper.
    o_ref[...] = jnp.dot(w_ref[...], a_ref[...],
                         preferred_element_type=jnp.float32)


def _vmem_capacity_bytes():
    try:
        return int(pltpu.get_tpu_info().vmem_capacity_bytes)
    except Exception:
        return 64 << 20          # conservative (v7x-sized) fallback


def _pick_o_tile(o_padded, k_total, b, a_bytes, vmem_bytes, min_steps=2):
    """Largest lane-dense O tile that fits the VMEM budget and divides O."""
    budget = int(vmem_bytes * 0.45)
    # double-buffered A tile + double-buffered f32 output tile, per lane
    per_lane = 2 * k_total * a_bytes + 2 * b * 4
    max_lanes = max(128, (budget // per_lane) // 128 * 128)
    # keep >= min_steps grid steps when possible (megacore sharding on v7x)
    cap = max(128, (o_padded // min_steps) // 128 * 128)
    target = min(max_lanes, cap, o_padded)
    t = max(128, (target // 128) * 128)
    while t > 128 and o_padded % t != 0:
        t -= 128
    return t


def prepare_archetypes(archetypes, num_in_dims, *, dtype=jnp.bfloat16):
    """One-time parameter prep: (out_shape + in_dims) -> (K_total, O_padded).

    Do this once when the parameter is created/updated, NOT per forward call;
    it is the only transpose/relayout/cast of the large tensor, so the kernel
    is the only per-call consumer of archetype HBM bandwidth.
    """
    out_shape = tuple(archetypes.shape[:-num_in_dims])
    o_total = math.prod(out_shape)
    k_total = math.prod(archetypes.shape[-num_in_dims:])
    a = archetypes.reshape(o_total, k_total).T.astype(dtype)      # (K, O)
    pad = (-o_total) % 128                                        # lane-dense O
    if pad:
        a = jnp.pad(a, ((0, 0), (0, pad)))
    return a, out_shape


@functools.partial(jax.jit, static_argnames=("out_shape", "o_tile"))
def soft_select(batch_weights, a_slab, *, out_shape, o_tile=None):
    """batch_weights: tuple of (B, K_i); a_slab/out_shape from prepare_archetypes."""
    b = batch_weights[0].shape[0]

    # Combined soft-selection weights: row-major outer product over the
    # in_dims, matching the row-major K flatten of the archetype slab.
    # Computed once here instead of per O-tile inside the kernel (removes the
    # per-step VPU/XLU repack noted in the perf review).
    w = batch_weights[0]
    for bw in batch_weights[1:]:
        w = (w[:, :, None] * bw[:, None, :]).reshape(b, -1)
    w = w.astype(a_slab.dtype)

    k_total, o_padded = a_slab.shape
    assert w.shape[1] == k_total

    vmem_bytes = _vmem_capacity_bytes()
    if o_tile is None:
        o_tile = _pick_o_tile(o_padded, k_total, b,
                              jnp.dtype(a_slab.dtype).itemsize, vmem_bytes)
    assert o_tile % 128 == 0 and o_padded % o_tile == 0

    grid = (o_padded // o_tile,)
    vmem_limit = min(int(vmem_bytes * 0.75), 100 << 20)

    out = pl.pallas_call(
        _soft_select_kernel,
        out_shape=jax.ShapeDtypeStruct((b, o_padded), jnp.float32),
        grid_spec=pltpu.PrefetchScalarGridSpec(
            num_scalar_prefetch=0,
            grid=grid,
            in_specs=[
                # Tiny combined weights: same block every step (stays resident).
                pl.BlockSpec((b, k_total), lambda j: (0, 0)),
                # Archetype slab: the only streamed operand, large lane-dense tiles.
                pl.BlockSpec((k_total, o_tile), lambda j: (0, j)),
            ],
            out_specs=pl.BlockSpec((b, o_tile), lambda j: (0, j)),
        ),
        compiler_params=pltpu.CompilerParams(
            dimension_semantics=("parallel",),
            vmem_limit_bytes=vmem_limit),
    )(w, a_slab)

    o_total = math.prod(out_shape)
    return out[:, :o_total].reshape((b,) + out_shape)


if __name__ == "__main__":
    key = jax.random.PRNGKey(0)
    k_arch, k_w1, k_w2 = jax.random.split(key, 3)

    B, K1, K2 = 8, 4, 8            # in_dims = (K1, K2)
    OUT_SHAPE = (16, 16)           # out_shape -> O_total = 256 (two 128-lane tiles)

    # Deterministic init matching torch: rand(out_shape + in_dims) * 0.02 - 0.01
    archetypes = jax.random.uniform(
        k_arch, OUT_SHAPE + (K1, K2), dtype=jnp.float32) * 0.02 - 0.01
    w1 = jax.random.normal(k_w1, (B, K1), dtype=jnp.float32)
    w2 = jax.random.normal(k_w2, (B, K2), dtype=jnp.float32)

    # ---- f32 slab path (bit-comparable to the plain-JAX reference) ----
    slab_f32, out_shape = prepare_archetypes(archetypes, 2, dtype=jnp.float32)
    out_f32 = jax.block_until_ready(
        soft_select((w1, w2), slab_f32, out_shape=out_shape))
    ref = jnp.einsum('ijkl,bk,bl->bij', archetypes, w1, w2)
    assert out_f32.shape == (B,) + OUT_SHAPE
    assert out_f32.dtype == jnp.float32
    assert jnp.allclose(out_f32, ref, atol=1e-5, rtol=1e-4)

    # ---- bf16 slab path (halves the dominant HBM stream; f32 accumulation) ----
    slab_bf16, _ = prepare_archetypes(archetypes, 2, dtype=jnp.bfloat16)
    out_bf16 = jax.block_until_ready(
        soft_select((w1, w2), slab_bf16, out_shape=out_shape))
    # Reference over the same bf16-rounded operands (products are exact in f32).
    w_bf = ((w1[:, :, None] * w2[:, None, :]).reshape(B, -1)
            ).astype(jnp.bfloat16).astype(jnp.float32)
    a_bf = archetypes.reshape(-1, K1 * K2).astype(jnp.bfloat16).astype(jnp.float32)
    ref_bf = (w_bf @ a_bf.T).reshape((B,) + OUT_SHAPE)
    assert out_bf16.shape == (B,) + OUT_SHAPE
    assert jnp.allclose(out_bf16, ref_bf, atol=1e-6, rtol=1e-3)

    print("KERNEL_OK")
</pallas_src>

<mosaic_0001>
module attributes {stable_mosaic.version = 11 : i64} {
  func.func @_soft_select_kernel(%arg0: i32, %arg1: memref<8x32xf32, #tpu.memory_space<vmem>>, %arg2: memref<32x128xf32, #tpu.memory_space<vmem>>, %arg3: memref<8x128xf32, #tpu.memory_space<vmem>>) attributes {dimension_semantics = [#tpu.dimension_semantics<parallel>], iteration_bounds = array<i64: 2>, scalar_prefetch = 0 : i64, scratch_operands = 0 : i64, tpu.core_type = #tpu.core_type<tc>, window_params = [{pipeline_mode = #tpu.pipeline_mode<synchronous>, transform_indices = @transform_0, window_bounds = array<i64: 8, 32>}, {transform_indices = @transform_1, window_bounds = array<i64: 32, 128>}, {transform_indices = @transform_2, window_bounds = array<i64: 8, 128>}]} {
    %c0 = arith.constant 0 : index
    %c0_0 = arith.constant 0 : index
    %0 = vector.load %arg1[%c0, %c0_0] : memref<8x32xf32, #tpu.memory_space<vmem>>, vector<8x32xf32>
    %c0_1 = arith.constant 0 : index
    %c0_2 = arith.constant 0 : index
    %1 = vector.load %arg2[%c0_1, %c0_2] : memref<32x128xf32, #tpu.memory_space<vmem>>, vector<32x128xf32>
    %cst = arith.constant dense<0.000000e+00> : vector<8x128xf32>
    %2 = tpu.matmul %0, %1, %cst {dimension_numbers = #tpu.dot_dimension_numbers<[1], [0], [0], [1], [0, 0, 1, 1], [], []>} : vector<8x32xf32>, vector<32x128xf32>, vector<8x128xf32> -> vector<8x128xf32>
    %c0_3 = arith.constant 0 : index
    %c0_4 = arith.constant 0 : index
    %3 = vector.load %arg3[%c0_3, %c0_4] : memref<8x128xf32, #tpu.memory_space<vmem>>, vector<8x128xf32>
    tpu.vector_store %arg3[%c0_3, %c0_4], %2 {strides = array<i32>} : memref<8x128xf32, #tpu.memory_space<vmem>>, vector<8x128xf32>,
    return
  }
  func.func @transform_0(%arg0: i32) -> (i32, i32) {
    %c0_i32 = arith.constant 0 : i32
    %c0_i32_0 = arith.constant 0 : i32
    %c0_i32_1 = arith.constant 0 : i32
    return %c0_i32, %c0_i32_0 : i32, i32
  }
  func.func @transform_1(%arg0: i32) -> (i32, i32) {
    %c0_i32 = arith.constant 0 : i32
    %c0_i32_0 = arith.constant 0 : i32
    return %c0_i32, %arg0 : i32, i32
  }
  func.func @transform_2(%arg0: i32) -> (i32, i32) {
    %c0_i32 = arith.constant 0 : i32
    %c0_i32_0 = arith.constant 0 : i32
    return %c0_i32, %arg0 : i32, i32
  }
}

</mosaic_0001>

<bundles_post_ra>
// kernel: soft_select.1
= control target key start
LH: loop header
LB: loop body
LE: loop exit
PB: predicated region body
PF: predicated region fallthrough
CT: control target
= control target key end

     0   :  { %s430_s9 = smov 0   ;;  %s432_s10 = smov 0   ;;  %s487_s0 = inlined_call_operand.vmem [shape: f32[8,32], index: 0, kind: input, shape index: {}]   ;;  %s488_s1 = inlined_call_operand.vmem [shape: f32[32,256], index: 1, kind: input, shape index: {}]   ;;  %s489_s2 = inlined_call_operand.vmem [shape: f32[8,256], index: 2, kind: output, shape index: {}]  }
   0x1   :  { %s434_s11 = smov 0  }
   0x2 LB: > { %s327_s12 = sadd.s32 4294967295, %s410_s11   ;;  %s447_s13 = sadd.s32 1, %s410_s11   ;;  %s410_s11 = sphi %s434_s11, %s492_s11   ;;  %s406_s10 = sphi %s432_s10, %s491_s10   ;;  %s402_s9 = sphi %s430_s9, %s490_s9  }
   0x3   : > { %s37_s14 = ssub.s32 %s410_s11, %s447_s13  ;;  %s40_s15 = sadd.s32 1, %s406_s10 }
   0x4   : > { %p38_p0 = scmp.eq.s32.totalorder %s37_s14, 0  ;;  %p47_p1 = scmp.ne.s32.totalorder %s406_s10, %s402_s9 }
   0x5   : > { %p48_p2 = scmp.eq.s32.totalorder %s410_s11, 0  ;;  %p330_p4 = scmp.ge.s32.totalorder %s410_s11, 2 }
   0x6   : > { %s456_s16 = scalar_select %p38_p0, %s406_s10, %s40_s15  }
   0x7   : > { %p49_p3 = por %p48_p2, %p47_p1  ;;  %102 = sbr.rel (%p330_p4) target bundleno = 21 (0x15), region = 20 }
   0xe   : > { %105 = sbr.rel (!%p49_p3) target bundleno = 21 (0x15), region = 24  ;;  %s107_s17 = sand.u32 (%p49_p3), 1, %s406_s10  }
   0xf   : > { %s332_s18 = sshll.u32 (%p49_p3), %s410_s11, 3  ;;  %s331_s19 = sshll.u32 (%p49_p3), %s107_s17, 5 }
  0x10   : > { %s111_s22 = scalar_lea.vmem (%p49_p3), %s488_s1, %s332_s18  ;;  %s109_s23 = scalar_lea.vmem (%p49_p3), [#allocation2], %s331_s19 }
  0x11   : > { %v145_v0 = vld [vmem:[%s111_s22] sm:$0xff] (%p49_p3)  ;;  %v147_v1 = vld [vmem:[%s111_s22 + $0x10] sm:$0xff] (%p49_p3) }
  0x12   : > { %v149_v2 = vld [vmem:[%s111_s22 + $0x20] sm:$0xff] (%p49_p3)  ;;  %146 = vst [vmem:[%s109_s23] sm:$0xff] (%p49_p3), %v145_v0  ;;  %148 = vst [vmem:[%s109_s23 + $0x8] sm:$0xff] (%p49_p3), %v147_v1  ;;  %v151_v3 = vld [vmem:[%s111_s22 + $0x30] sm:$0xff] (%p49_p3) }
  0x13   : > { %150 = vst [vmem:[%s109_s23 + $0x10] sm:$0xff] (%p49_p3), %v149_v2  ;;  %152 = vst [vmem:[%s109_s23 + $0x18] sm:$0xff] (%p49_p3), %v151_v3 }
  0x15 PF: > { %p333_p5 = scmp.ge.s32.totalorder %s410_s11, 1  ;;  %p157_p6 = scmp.lt.s32.totalorder %s410_s11, 3 }
  0x17   : > { %p158_p7 = pnand %p333_p5, %p157_p6 }
  0x18   : > { %s164_s24 = sand.u32 (!%p158_p7), 1, %s402_s9   ;;  %v412_v4 = vmov (!%p158_p7), 0.0|0.0   ;;  %vm413_vm0 = vmmov (!%p158_p7), 0   ;;  %v414_v5 = vmov (!%p158_p7), 0.0   ;;  %v188_v12 = vld [vmem:[%s487_s0] sm:$0xff] (!%p158_p7)  ;;  %vm193_vm1 = vcmask (!%p158_p7), 261120  }
  0x19   : > { %161 = sbr.rel (%p158_p7) target bundleno = 250 (0xfa), region = 62  ;;  %355 = vmatprep.subr.bf16.mxu0 (!%p158_p7), %v412_v4  ;;  %s334_s25 = sshll.u32 (!%p158_p7), %s164_s24, 5  ;;  %352 = vmatprep.mubr.msk.f32.mxu0 (!%p158_p7), %vm413_vm0, %v414_v5 }
  0x1a   : > { %s166_s26 = scalar_lea.vmem (!%p158_p7), [#allocation2], %s334_s25  ;;  %p184_p8 = scmp.lt.s32.totalorder (!%p158_p7), %s327_s12, 1 }
  0x1b   : > { %v189_v6 = vld [vmem:[%s166_s26] sm:$0xff] (!%p158_p7)  ;;  %v190_v7 = vld [vmem:[%s166_s26 + $0x8] sm:$0xff] (!%p158_p7)  ;;  %v191_v8 = vld [vmem:[%s166_s26 + $0x10] sm:$0xff] (!%p158_p7) }
  0x1c   : > { %v356_v9 = vpack.c.bf16 (!%p158_p7), %v190_v7, %v189_v6  ;;  %v192_v10 = vld [vmem:[%s166_s26 + $0x18] sm:$0xff] (!%p158_p7) }
  0x1d   : > { %v359_v11 = vpack.c.bf16 (!%p158_p7), %v192_v10, %v191_v8 }
  0x1e   : > { %357 = vmatpush3.bf16.msra.mxu0 (!%p158_p7), %v356_v9 }
  0x1f   : > { %358 = vmatprep.subr.bf16.mxu0 (!%p158_p7), %v412_v4 }
  0x20   : > { %s494_s12 = smov (!%p184_p8, %s327_s12), 1 }
  0x21   : > { %s335_s29 = sshll.u32 %s494_s12, 3 }
  0x22   : > { %360 = vmatpush3.bf16.msra.mxu0 %v359_v11  ;;  %s187_s4 = scalar_lea.vmem %s489_s2, %s335_s29 }
  0x25   : > { %353 = vmatmul.mubr.msk.f32.vlgmr.msra.gmra.mrb[0].mxu0 %vm193_vm1, %v188_v12 }
  0xf8   : > { %v263_v13 = vpop.f32.mrb[0].mxu0 }
  0xf9   : > { %267 = vst [vmem:[%s187_s4] sm:$0xff] %v263_v13  ;;  %v354_v14 = vpop.f32.mrb[1].mxu0 }
  0xfa PF: > { %p9_p9 = scmp.ge.s32.totalorder %s447_s13, 4   ;;  %s490_s9 = smov %s406_s10 }
  0xfb   : > { %s491_s10 = smov %s456_s16  ;;  %s492_s11 = smov %s447_s13 }
  0xfc   :  { %11 = sbr.rel (!%p9_p9) target bundleno = 2 (0x2), region = 101 }

</bundles_post_ra>
